<compile_context>
chip_gen: v7x
topology: tpu7x:2x2x1
jax: 0.10.0
libtpu: 0.0.40
codegen_flags: <defaults>
</compile_context>

<pallas_src>
import jax
import jax.numpy as jnp
from jax.experimental import pallas as pl
from jax.experimental.pallas import tpu as pltpu


def _round_up(x, m):
    return (x + m - 1) // m * m


def actor_ram_kernel(x_ref, w1_ref, b1_ref, w2_ref, b2_ref, w3_ref, b3_ref, o_ref):
    x = x_ref[...]                                             # [TB, Sp] bf16

    # l1 + ReLU  (bf16 MXU operands, f32 accumulate)
    h1 = jnp.dot(x, w1_ref[...], preferred_element_type=jnp.float32) + b1_ref[...]
    h1 = jnp.maximum(h1, 0.0).astype(jnp.bfloat16)

    # l2 + ReLU
    h2 = jnp.dot(h1, w2_ref[...], preferred_element_type=jnp.float32) + b2_ref[...]
    h2 = jnp.maximum(h2, 0.0).astype(jnp.bfloat16)

    # l3 + softmax(dim=-1); padded action lanes carry a -1e30 bias -> exp == 0
    logits = jnp.dot(h2, w3_ref[...], preferred_element_type=jnp.float32) + b3_ref[...]
    m = jnp.max(logits, axis=-1, keepdims=True)
    e = jnp.exp(logits - m)
    inv = pl.reciprocal(jnp.sum(e, axis=-1, keepdims=True), approx=True)
    o_ref[...] = (e * inv).astype(o_ref.dtype)


def actor_ram_forward(state, params, *, tb=None):
    """state: [B, state_dim] f32 -> action probabilities [B, action_dim] f32."""
    w1, b1, w2, b2, w3, b3 = params
    B, S = state.shape
    H = w1.shape[1]
    A = w3.shape[1]

    # pad feature dims to full MXU/lane tiles
    Sp = _round_up(S, 128)
    Hp = _round_up(H, 128)
    Ap = _round_up(A, 128)

    # batch tile: multiple of 16 (bf16 sublane packing), capped at 256
    if tb is None:
        tb = 256 if B >= 256 else _round_up(max(B, 1), 16)
    tb = _round_up(tb, 16)
    Bp = _round_up(B, tb)

    NEG = jnp.float32(-1e30)

    # pad + cast weights (bf16 MXU operands); biases stay f32
    w1p = jnp.zeros((Sp, Hp), jnp.bfloat16).at[:S, :H].set(w1.astype(jnp.bfloat16))
    b1p = jnp.zeros((1, Hp), jnp.float32).at[:, :H].set(b1)
    w2p = jnp.zeros((Hp, Hp), jnp.bfloat16).at[:H, :H].set(w2.astype(jnp.bfloat16))
    b2p = jnp.zeros((1, Hp), jnp.float32).at[:, :H].set(b2)
    w3p = jnp.zeros((Hp, Ap), jnp.bfloat16).at[:H, :A].set(w3.astype(jnp.bfloat16))
    b3p = jnp.full((1, Ap), NEG, jnp.float32).at[:, :A].set(b3)

    xp = jnp.zeros((Bp, Sp), jnp.bfloat16).at[:B, :S].set(state.astype(jnp.bfloat16))

    grid = (Bp // tb,)

    out = pl.pallas_call(
        actor_ram_kernel,
        out_shape=jax.ShapeDtypeStruct((Bp, Ap), jnp.float32),
        grid=grid,
        in_specs=[
            pl.BlockSpec((tb, Sp), lambda i: (i, 0)),   # state tile (pipelined)
            pl.BlockSpec((Sp, Hp), lambda i: (0, 0)),   # w1 (VMEM-resident)
            pl.BlockSpec((1, Hp), lambda i: (0, 0)),    # b1
            pl.BlockSpec((Hp, Hp), lambda i: (0, 0)),   # w2
            pl.BlockSpec((1, Hp), lambda i: (0, 0)),    # b2
            pl.BlockSpec((Hp, Ap), lambda i: (0, 0)),   # w3
            pl.BlockSpec((1, Ap), lambda i: (0, 0)),    # b3
        ],
        out_specs=pl.BlockSpec((tb, Ap), lambda i: (i, 0)),
        compiler_params=pltpu.CompilerParams(
            dimension_semantics=("parallel",)),         # megacore on v7x
    )(xp, w1p, b1p, w2p, b2p, w3p, b3p)

    return out[:B, :A]


def init_actor_ram_params(key, state_dim, action_dim, hidden_size):
    """PyTorch-nn.Linear-style init: uniform(-1/sqrt(fan_in), +1/sqrt(fan_in)).
    Weights are stored already transposed to [in, out] for the kernel."""
    def linear(key, fan_in, fan_out):
        kw, kb = jax.random.split(key)
        bound = 1.0 / jnp.sqrt(jnp.float32(fan_in))
        w = jax.random.uniform(kw, (fan_in, fan_out), jnp.float32, -bound, bound)
        b = jax.random.uniform(kb, (1, fan_out), jnp.float32, -bound, bound)
        return w, b

    k1, k2, k3 = jax.random.split(key, 3)
    w1, b1 = linear(k1, state_dim, hidden_size)
    w2, b2 = linear(k2, hidden_size, hidden_size)
    w3, b3 = linear(k3, hidden_size, action_dim)
    return (w1, b1, w2, b2, w3, b3)


def reference_forward(state, params):
    w1, b1, w2, b2, w3, b3 = params
    a = jnp.maximum(state @ w1 + b1, 0.0)
    a = jnp.maximum(a @ w2 + b2, 0.0)
    return jax.nn.softmax(a @ w3 + b3, axis=-1)


if __name__ == "__main__":
    key = jax.random.PRNGKey(0)
    k_params, k_state = jax.random.split(key)

    batch = 2
    state_dim = 16
    action_dim = 8
    hidden_size = 32  # small stand-in for the default 512

    params = init_actor_ram_params(k_params, state_dim, action_dim, hidden_size)
    state = jax.random.normal(k_state, (batch, state_dim), jnp.float32)

    out = jax.block_until_ready(actor_ram_forward(state, params))
    ref = reference_forward(state, params)
    assert out.shape == (batch, action_dim)
    # bf16 MXU operands + approx reciprocal -> looser tolerances vs f32 reference
    assert jnp.allclose(jnp.sum(out, axis=-1), 1.0, atol=5e-3)
    assert jnp.allclose(out, ref, atol=2e-2)

    # exercise the multi-step batch grid + batch-padding path
    state2 = jax.random.normal(jax.random.PRNGKey(1), (40, state_dim), jnp.float32)
    out2 = jax.block_until_ready(actor_ram_forward(state2, params, tb=16))
    ref2 = reference_forward(state2, params)
    assert out2.shape == (40, action_dim)
    assert jnp.allclose(out2, ref2, atol=2e-2)

    print("KERNEL_OK")
</pallas_src>

<mosaic_0001>
module attributes {stable_mosaic.version = 11 : i64} {
  func.func @actor_ram_kernel(%arg0: i32, %arg1: memref<16x128xbf16, #tpu.memory_space<vmem>>, %arg2: memref<128x128xbf16, #tpu.memory_space<vmem>>, %arg3: memref<1x128xf32, #tpu.memory_space<vmem>>, %arg4: memref<128x128xbf16, #tpu.memory_space<vmem>>, %arg5: memref<1x128xf32, #tpu.memory_space<vmem>>, %arg6: memref<128x128xbf16, #tpu.memory_space<vmem>>, %arg7: memref<1x128xf32, #tpu.memory_space<vmem>>, %arg8: memref<16x128xf32, #tpu.memory_space<vmem>>) attributes {dimension_semantics = [#tpu.dimension_semantics<parallel>], iteration_bounds = array<i64: 1>, scalar_prefetch = 0 : i64, scratch_operands = 0 : i64, tpu.core_type = #tpu.core_type<tc>, window_params = [{transform_indices = @transform_0, window_bounds = array<i64: 16, 128>}, {pipeline_mode = #tpu.pipeline_mode<synchronous>, transform_indices = @transform_1, window_bounds = array<i64: 128, 128>}, {pipeline_mode = #tpu.pipeline_mode<synchronous>, transform_indices = @transform_2, window_bounds = array<i64: 1, 128>}, {pipeline_mode = #tpu.pipeline_mode<synchronous>, transform_indices = @transform_3, window_bounds = array<i64: 128, 128>}, {pipeline_mode = #tpu.pipeline_mode<synchronous>, transform_indices = @transform_4, window_bounds = array<i64: 1, 128>}, {pipeline_mode = #tpu.pipeline_mode<synchronous>, transform_indices = @transform_5, window_bounds = array<i64: 128, 128>}, {pipeline_mode = #tpu.pipeline_mode<synchronous>, transform_indices = @transform_6, window_bounds = array<i64: 1, 128>}, {transform_indices = @transform_7, window_bounds = array<i64: 16, 128>}]} {
    %c0 = arith.constant 0 : index
    %c0_0 = arith.constant 0 : index
    %0 = vector.load %arg1[%c0, %c0_0] : memref<16x128xbf16, #tpu.memory_space<vmem>>, vector<16x128xbf16>
    %c0_1 = arith.constant 0 : index
    %c0_2 = arith.constant 0 : index
    %1 = vector.load %arg2[%c0_1, %c0_2] : memref<128x128xbf16, #tpu.memory_space<vmem>>, vector<128x128xbf16>
    %cst = arith.constant dense<0.000000e+00> : vector<16x128xf32>
    %2 = tpu.matmul %0, %1, %cst {dimension_numbers = #tpu.dot_dimension_numbers<[1], [0], [0], [1], [0, 0, 1, 1], [], []>} : vector<16x128xbf16>, vector<128x128xbf16>, vector<16x128xf32> -> vector<16x128xf32>
    %c0_3 = arith.constant 0 : index
    %c0_4 = arith.constant 0 : index
    %3 = vector.load %arg3[%c0_3, %c0_4] : memref<1x128xf32, #tpu.memory_space<vmem>>, vector<1x128xf32>
    %4 = vector.broadcast %3 : vector<1x128xf32> to vector<16x128xf32>
    %5 = arith.addf %2, %4 : vector<16x128xf32>
    %cst_5 = arith.constant 0.000000e+00 : f32
    %6 = vector.broadcast %cst_5 : f32 to vector<16x128xf32>
    %7 = arith.maximumf %5, %6 : vector<16x128xf32>
    %8 = arith.truncf %7 : vector<16x128xf32> to vector<16x128xbf16>
    %c0_6 = arith.constant 0 : index
    %c0_7 = arith.constant 0 : index
    %9 = vector.load %arg4[%c0_6, %c0_7] : memref<128x128xbf16, #tpu.memory_space<vmem>>, vector<128x128xbf16>
    %cst_8 = arith.constant dense<0.000000e+00> : vector<16x128xf32>
    %10 = tpu.matmul %8, %9, %cst_8 {dimension_numbers = #tpu.dot_dimension_numbers<[1], [0], [0], [1], [0, 0, 1, 1], [], []>} : vector<16x128xbf16>, vector<128x128xbf16>, vector<16x128xf32> -> vector<16x128xf32>
    %c0_9 = arith.constant 0 : index
    %c0_10 = arith.constant 0 : index
    %11 = vector.load %arg5[%c0_9, %c0_10] : memref<1x128xf32, #tpu.memory_space<vmem>>, vector<1x128xf32>
    %12 = vector.broadcast %11 : vector<1x128xf32> to vector<16x128xf32>
    %13 = arith.addf %10, %12 : vector<16x128xf32>
    %cst_11 = arith.constant 0.000000e+00 : f32
    %14 = vector.broadcast %cst_11 : f32 to vector<16x128xf32>
    %15 = arith.maximumf %13, %14 : vector<16x128xf32>
    %16 = arith.truncf %15 : vector<16x128xf32> to vector<16x128xbf16>
    %c0_12 = arith.constant 0 : index
    %c0_13 = arith.constant 0 : index
    %17 = vector.load %arg6[%c0_12, %c0_13] : memref<128x128xbf16, #tpu.memory_space<vmem>>, vector<128x128xbf16>
    %cst_14 = arith.constant dense<0.000000e+00> : vector<16x128xf32>
    %18 = tpu.matmul %16, %17, %cst_14 {dimension_numbers = #tpu.dot_dimension_numbers<[1], [0], [0], [1], [0, 0, 1, 1], [], []>} : vector<16x128xbf16>, vector<128x128xbf16>, vector<16x128xf32> -> vector<16x128xf32>
    %c0_15 = arith.constant 0 : index
    %c0_16 = arith.constant 0 : index
    %19 = vector.load %arg7[%c0_15, %c0_16] : memref<1x128xf32, #tpu.memory_space<vmem>>, vector<1x128xf32>
    %20 = vector.broadcast %19 : vector<1x128xf32> to vector<16x128xf32>
    %21 = arith.addf %18, %20 : vector<16x128xf32>
    %cst_17 = arith.constant dense<0xFF800000> : vector<16xf32>
    %22 = vector.multi_reduction <maximumf>, %21, %cst_17 [1] : vector<16x128xf32> to vector<16xf32>
    %23 = vector.shape_cast %22 : vector<16xf32> to vector<16x1xf32>
    %24 = vector.broadcast %23 : vector<16x1xf32> to vector<16x128xf32>
    %25 = arith.subf %21, %24 : vector<16x128xf32>
    %26 = math.exp %25 : vector<16x128xf32>
    %cst_18 = arith.constant dense<0.000000e+00> : vector<16xf32>
    %27 = vector.multi_reduction <add>, %26, %cst_18 [1] : vector<16x128xf32> to vector<16xf32>
    %28 = vector.shape_cast %27 : vector<16xf32> to vector<16x1xf32>
    %29 = tpu.reciprocal %28 {approx = true} : vector<16x1xf32> -> vector<16x1xf32>
    %30 = vector.broadcast %29 : vector<16x1xf32> to vector<16x128xf32>
    %31 = arith.mulf %26, %30 : vector<16x128xf32>
    %c0_19 = arith.constant 0 : index
    %c0_20 = arith.constant 0 : index
    %32 = vector.load %arg8[%c0_19, %c0_20] : memref<16x128xf32, #tpu.memory_space<vmem>>, vector<16x128xf32>
    tpu.vector_store %arg8[%c0_19, %c0_20], %31 {strides = array<i32>} : memref<16x128xf32, #tpu.memory_space<vmem>>, vector<16x128xf32>,
    return
  }
  func.func @transform_0(%arg0: i32) -> (i32, i32) {
    %c0_i32 = arith.constant 0 : i32
    %c0_i32_0 = arith.constant 0 : i32
    return %arg0, %c0_i32 : i32, i32
  }
  func.func @transform_1(%arg0: i32) -> (i32, i32) {
    %c0_i32 = arith.constant 0 : i32
    %c0_i32_0 = arith.constant 0 : i32
    %c0_i32_1 = arith.constant 0 : i32
    return %c0_i32, %c0_i32_0 : i32, i32
  }
  func.func @transform_2(%arg0: i32) -> (i32, i32) {
    %c0_i32 = arith.constant 0 : i32
    %c0_i32_0 = arith.constant 0 : i32
    %c0_i32_1 = arith.constant 0 : i32
    return %c0_i32, %c0_i32_0 : i32, i32
  }
  func.func @transform_3(%arg0: i32) -> (i32, i32) {
    %c0_i32 = arith.constant 0 : i32
    %c0_i32_0 = arith.constant 0 : i32
    %c0_i32_1 = arith.constant 0 : i32
    return %c0_i32, %c0_i32_0 : i32, i32
  }
  func.func @transform_4(%arg0: i32) -> (i32, i32) {
    %c0_i32 = arith.constant 0 : i32
    %c0_i32_0 = arith.constant 0 : i32
    %c0_i32_1 = arith.constant 0 : i32
    return %c0_i32, %c0_i32_0 : i32, i32
  }
  func.func @transform_5(%arg0: i32) -> (i32, i32) {
    %c0_i32 = arith.constant 0 : i32
    %c0_i32_0 = arith.constant 0 : i32
    %c0_i32_1 = arith.constant 0 : i32
    return %c0_i32, %c0_i32_0 : i32, i32
  }
  func.func @transform_6(%arg0: i32) -> (i32, i32) {
    %c0_i32 = arith.constant 0 : i32
    %c0_i32_0 = arith.constant 0 : i32
    %c0_i32_1 = arith.constant 0 : i32
    return %c0_i32, %c0_i32_0 : i32, i32
  }
  func.func @transform_7(%arg0: i32) -> (i32, i32) {
    %c0_i32 = arith.constant 0 : i32
    %c0_i32_0 = arith.constant 0 : i32
    return %arg0, %c0_i32 : i32, i32
  }
}

</mosaic_0001>

<bundles_post_ra>
// kernel: tpu_custom_call.1
= control target key start
LH: loop header
LB: loop body
LE: loop exit
PB: predicated region body
PF: predicated region fallthrough
CT: control target
= control target key end

     0   :  { %12 = vsyncpa [#allocation3], 0  ;;  %s925_s0 = inlined_call_operand.hbm [shape: bf16[16,128], index: 0, kind: input, shape index: {}]   ;;  %s926_s1 = inlined_call_operand.hbm [shape: bf16[128,128], index: 1, kind: input, shape index: {}]   ;;  %s927_s2 = inlined_call_operand.vmem [shape: f32[1,128], index: 2, kind: input, shape index: {}]   ;;  %s928_s3 = inlined_call_operand.hbm [shape: bf16[128,128], index: 3, kind: input, shape index: {}]   ;;  %s929_s4 = inlined_call_operand.vmem [shape: f32[1,128], index: 4, kind: input, shape index: {}]   ;;  %s930_s5 = inlined_call_operand.hbm [shape: bf16[128,128], index: 5, kind: input, shape index: {}]   ;;  %s931_s6 = inlined_call_operand.vmem [shape: f32[1,128], index: 6, kind: input, shape index: {}]   ;;  %s932_s7 = inlined_call_operand.hbm [shape: f32[16,128], index: 7, kind: output, shape index: {}]  }
   0x1   :  { %13 = vsyncpa [#allocation6], 0 }
   0x2   :  { %14 = vsyncpa [#allocation9], 0 }
   0x3   :  { %15 = vsyncpa [#allocation4], 0  ;;  %s749_s24 = smov [#allocation5]   ;;  %s750_s26 = smov [#allocation2]  }
   0x4   :  { %s33_s25 = sshll.u32 %s749_s24, 4  ;;  %s21_s27 = sshll.u32 %s750_s26, 4  ;;  %s34_s25 = int_to_ptr.vmem [resolvable:$true] %s33_s25  ;;  %s800_s27 = int_to_ptr.vmem [resolvable:$true] %s21_s27 }
   0x5   :  { %s631_s30 = scalar_lea.hbm %s926_s1, 1024 }
   0x6   :  { %p632_p0 = scmp.ne.s32.totalorder %s926_s1, %s631_s30  ;;  %p635_p1 = scmp.lt.u32.totalorder %s631_s30, %s926_s1 }
   0x8   :  { %p637_p2 = pnand %p635_p1, %p632_p0 }
   0xa   :  { %640 = shalt.err (!%p637_p2)
}
   0xb   :  { %s641_s12 = scalar_lea.vmem %s34_s25, 1024  ;;  %p646_p4 = scmp.lt.s32.totalorder %s34_s25, %s34_s25 }
   0xc   :  { %p642_p3 = scmp.ne.s32.totalorder %s34_s25, %s641_s12  ;;  %p647_p5 = scmp.lt.s32.totalorder %s641_s12, %s641_s12 }
   0xe   :  { %p648_p6 = por %p647_p5, %p646_p4 }
  0x10   :  { %p649_p7 = pnand %p648_p6, %p642_p3 }
  0x12   :  { %652 = shalt.err (!%p649_p7)
}
  0x13   :  { %s751_s13 = smov 64   ;;  %s752_s14 = smov 4  }
  0x14   :  { %39 = dma.hbm_to_vmem [thread:$0]  %s926_s1, 1024, %s34_s25, [#allocation6], %s751_s13, %s751_s13, %s752_s14  }
  0x15   :  { %s653_s19 = scalar_lea.hbm %s925_s0, 128 }
  0x16   :  { %p654_p8 = scmp.ne.s32.totalorder %s925_s0, %s653_s19  ;;  %p657_p9 = scmp.lt.u32.totalorder %s653_s19, %s925_s0 }
  0x18   :  { %p659_p10 = pnand %p657_p9, %p654_p8 }
  0x1a   :  { %662 = shalt.err (!%p659_p10)
}
  0x1b   :  { %s663_s24 = scalar_lea.vmem %s800_s27, 128  ;;  %p668_p12 = scmp.lt.s32.totalorder %s800_s27, %s800_s27 }
  0x1c   :  { %p664_p11 = scmp.ne.s32.totalorder %s800_s27, %s663_s24  ;;  %p669_p13 = scmp.lt.s32.totalorder %s663_s24, %s663_s24 }
  0x1e   :  { %p670_p0 = por %p669_p13, %p668_p12 }
  0x20   :  { %p671_p1 = pnand %p670_p0, %p664_p11 }
  0x22   :  { %674 = shalt.err (!%p671_p1)
}
  0x23   :  { %27 = dma.hbm_to_vmem [thread:$0]  %s925_s0, 128, %s800_s27, [#allocation3], %s751_s13, %s751_s13, %s752_s14  }
  0x24   :  { %s753_s26 = smov [#allocation7]   ;;  %s754_s29 = smov [#allocation8]  }
  0x25   :  { %s47_s28 = sshll.u32 %s753_s26, 4  ;;  %s61_s30 = sshll.u32 %s754_s29, 4  ;;  %s48_s28 = int_to_ptr.vmem [resolvable:$true] %s47_s28  ;;  %s837_s30 = int_to_ptr.vmem [resolvable:$true] %s61_s30 }
  0x26   :  { %s675_s10 = scalar_lea.hbm %s928_s3, 1024 }
  0x27   :  { %p676_p2 = scmp.ne.s32.totalorder %s928_s3, %s675_s10  ;;  %p679_p3 = scmp.lt.u32.totalorder %s675_s10, %s928_s3 }
  0x29   :  { %p681_p4 = pnand %p679_p3, %p676_p2 }
  0x2b   :  { %684 = shalt.err (!%p681_p4)
}
  0x2c   :  { %s685_s0 = scalar_lea.vmem %s48_s28, 1024  ;;  %p690_p6 = scmp.lt.s32.totalorder %s48_s28, %s48_s28 }
  0x2d   :  { %p686_p5 = scmp.ne.s32.totalorder %s48_s28, %s685_s0  ;;  %p691_p7 = scmp.lt.s32.totalorder %s685_s0, %s685_s0 }
  0x2f   :  { %p692_p8 = por %p691_p7, %p690_p6 }
  0x31   :  { %p693_p9 = pnand %p692_p8, %p686_p5 }
  0x33   :  { %696 = shalt.err (!%p693_p9)
}
  0x34   :  { %53 = dma.hbm_to_vmem [thread:$0]  %s928_s3, 1024, %s48_s28, [#allocation6], %s751_s13, %s751_s13, %s752_s14  }
  0x35   :  { %s697_s20 = scalar_lea.hbm %s930_s5, 1024 }
  0x36   :  { %p698_p10 = scmp.ne.s32.totalorder %s930_s5, %s697_s20  ;;  %p701_p11 = scmp.lt.u32.totalorder %s697_s20, %s930_s5 }
  0x38   :  { %p703_p12 = pnand %p701_p11, %p698_p10 }
  0x3a   :  { %706 = shalt.err (!%p703_p12)
}
  0x3b   :  { %s707_s1 = scalar_lea.vmem %s837_s30, 1024  ;;  %p712_p0 = scmp.lt.s32.totalorder %s837_s30, %s837_s30 }
  0x3c   :  { %p708_p13 = scmp.ne.s32.totalorder %s837_s30, %s707_s1  ;;  %p713_p1 = scmp.lt.s32.totalorder %s707_s1, %s707_s1 }
  0x3e   :  { %p714_p2 = por %p713_p1, %p712_p0 }
  0x40   :  { %p715_p3 = pnand %p714_p2, %p708_p13 }
  0x42   :  { %718 = shalt.err (!%p715_p3)
}
  0x43   :  { %67 = dma.hbm_to_vmem [thread:$0]  %s930_s5, 1024, %s837_s30, [#allocation9], %s751_s13, %s751_s13, %s752_s14  }
  0x44   :  { %741 = dma.done.wait [#allocation3], 128  }
  0x45   :  { %742 = vsyncadd [#allocation3], 4294967168 }
  0x46   :  { %743 = dma.done.wait [#allocation6], 2048  }
  0x47   :  { %744 = vsyncadd [#allocation6], 4294965248 }
  0x48   :  { %745 = dma.done.wait [#allocation9], 1024  }
  0x49   :  { %746 = vsyncadd [#allocation9], 4294966272  ;;  %v755_v0 = vmov 0.0   ;;  %vm756_vm0 = vmmov 0   ;;  %v598_v1 = vld [vmem:[#allocation5] sm:$0xff]   ;;  %v599_v2 = vld [vmem:[#allocation5 + $0x8] sm:$0xff]  }
  0x4a   :  { %527 = vmatprep.subr.bf16.mxu0 %v755_v0  ;;  %543 = vmatprep.mubr.msk.bf16.mxu0 %vm756_vm0, %v755_v0  ;;  %v600_v3 = vld [vmem:[#allocation5 + $0x10] sm:$0xff]   ;;  %v607_v4 = vld [vmem:[#allocation7] sm:$0xff]   ;;  %v601_v5 = vld [vmem:[#allocation5 + $0x18] sm:$0xff]  }
  0x4b   :  { %547 = vmatprep.subr.bf16.mxu1 %v755_v0  ;;  %563 = vmatprep.mubr.msk.bf16.mxu1 %vm756_vm0, %v755_v0  ;;  %v608_v6 = vld [vmem:[#allocation7 + $0x8] sm:$0xff]   ;;  %v602_v7 = vld [vmem:[#allocation5 + $0x20] sm:$0xff]   ;;  %v609_v8 = vld [vmem:[#allocation7 + $0x10] sm:$0xff]  }
  0x4c   :  { %528 = vmatpush3.bf16.msra.mxu0 %v598_v1  ;;  %548 = vmatpush3.bf16.msra.mxu1 %v607_v4  ;;  %v603_v9 = vld [vmem:[#allocation5 + $0x28] sm:$0xff]   ;;  %v610_v10 = vld [vmem:[#allocation7 + $0x18] sm:$0xff]   ;;  %v604_v11 = vld [vmem:[#allocation5 + $0x30] sm:$0xff]  }
  0x4d   :  { %529 = vmatprep.subr.bf16.mxu0 %v755_v0  ;;  %549 = vmatprep.subr.bf16.mxu1 %v755_v0  ;;  %v611_v12 = vld [vmem:[#allocation7 + $0x20] sm:$0xff]   ;;  %v605_v13 = vld [vmem:[#allocation5 + $0x38] sm:$0xff]   ;;  %v612_v14 = vld [vmem:[#allocation7 + $0x28] sm:$0xff]  }
  0x4e   :  { %v606_v15 = vld [vmem:[#allocation2] sm:$0xff]   ;;  %v613_v16 = vld [vmem:[#allocation7 + $0x30] sm:$0xff]   ;;  %v615_v18 = vld [vmem:[#allocation8] sm:$0xff]  }
  0x4f   :  { %v614_v17 = vld [vmem:[#allocation7 + $0x38] sm:$0xff]   ;;  %v616_v19 = vld [vmem:[#allocation8 + $0x8] sm:$0xff]   ;;  %v617_v20 = vld [vmem:[#allocation8 + $0x10] sm:$0xff]  }
  0x50   :  { %530 = vmatpush3.bf16.msra.mxu0 %v599_v2  ;;  %550 = vmatpush3.bf16.msra.mxu1 %v608_v6  ;;  %v618_v21 = vld [vmem:[#allocation8 + $0x18] sm:$0xff]   ;;  %v619_v22 = vld [vmem:[#allocation8 + $0x20] sm:$0xff]   ;;  %v620_v23 = vld [vmem:[#allocation8 + $0x28] sm:$0xff]  }
  0x51   :  { %531 = vmatprep.subr.bf16.mxu0 %v755_v0  ;;  %551 = vmatprep.subr.bf16.mxu1 %v755_v0  ;;  %v472_v24 = vld [vmem:[%s927_s2] ss:$0 sm:$0xff]  ;;  %v621_v34 = vld [vmem:[#allocation8 + $0x30] sm:$0xff]  }
  0x52   :  { %v622_v35 = vld [vmem:[#allocation8 + $0x38] sm:$0xff]  }
  0x53   :  { %v482_v36 = vld [vmem:[%s929_s4] ss:$0 sm:$0xff]  ;;  %s757_s4 = smov [#allocation10]  }
  0x54   :  { %532 = vmatpush3.bf16.msra.mxu0 %v600_v3  ;;  %552 = vmatpush3.bf16.msra.mxu1 %v609_v8  ;;  %v491_v46 = vld [vmem:[%s931_s6] ss:$0 sm:$0xff]  ;;  %s458_s6 = sshll.u32 %s757_s4, 4  ;;  %s459_s6 = int_to_ptr.vmem [resolvable:$true] %s458_s6 }
  0x55   :  { %533 = vmatprep.subr.bf16.mxu0 %v755_v0  ;;  %553 = vmatprep.subr.bf16.mxu1 %v755_v0  ;;  %s719_s29 = scalar_lea.vmem %s459_s6, 256  ;;  %p724_p5 = scmp.lt.s32.totalorder %s459_s6, %s459_s6 }
  0x56   :  { %p720_p4 = scmp.ne.s32.totalorder %s459_s6, %s719_s29  ;;  %p725_p6 = scmp.lt.s32.totalorder %s719_s29, %s719_s29 }
  0x58   :  { %534 = vmatpush3.bf16.msra.mxu0 %v601_v5  ;;  %554 = vmatpush3.bf16.msra.mxu1 %v610_v10  ;;  %p726_p7 = por %p725_p6, %p724_p5 }
  0x59   :  { %535 = vmatprep.subr.bf16.mxu0 %v755_v0  ;;  %555 = vmatprep.subr.bf16.mxu1 %v755_v0 }
  0x5a   :  { %p727_p8 = pnand %p726_p7, %p720_p4 }
  0x5c   :  { %536 = vmatpush3.bf16.msra.mxu0 %v602_v7  ;;  %556 = vmatpush3.bf16.msra.mxu1 %v611_v12 }
  0x5d   :  { %537 = vmatprep.subr.bf16.mxu0 %v755_v0  ;;  %557 = vmatprep.subr.bf16.mxu1 %v755_v0 }
  0x60   :  { %538 = vmatpush3.bf16.msra.mxu0 %v603_v9  ;;  %558 = vmatpush3.bf16.msra.mxu1 %v612_v14 }
  0x61   :  { %539 = vmatprep.subr.bf16.mxu0 %v755_v0  ;;  %559 = vmatprep.subr.bf16.mxu1 %v755_v0 }
  0x64   :  { %540 = vmatpush3.bf16.msra.mxu0 %v604_v11  ;;  %560 = vmatpush3.bf16.msra.mxu1 %v613_v16 }
  0x65   :  { %541 = vmatprep.subr.bf16.mxu0 %v755_v0  ;;  %561 = vmatprep.subr.bf16.mxu1 %v755_v0 }
  0x68   :  { %542 = vmatpush3.bf16.msra.mxu0 %v605_v13  ;;  %562 = vmatpush3.bf16.msra.mxu1 %v614_v17 }
  0x69   :  { %567 = vmatprep.subr.bf16.mxu0 %v755_v0 }
  0x6b   :  { %544 = vmatmul.mubr.bf16.vlgmr.msra.gmra.mrb[0].mxu0 %v606_v15 }
  0x6c   :  { %583 = vmatprep.mubr.msk.bf16.mxu0 %vm756_vm0, %v755_v0  ;;  %568 = vmatpush3.bf16.msra.mxu0 %v615_v18 }
  0x6d   :  { %569 = vmatprep.subr.bf16.mxu0 %v755_v0 }
  0x70   :  { %570 = vmatpush3.bf16.msra.mxu0 %v616_v19 }
  0x71   :  { %571 = vmatprep.subr.bf16.mxu0 %v755_v0 }
  0x74   :  { %572 = vmatpush3.bf16.msra.mxu0 %v617_v20 }
  0x75   :  { %573 = vmatprep.subr.bf16.mxu0 %v755_v0 }
  0x78   :  { %574 = vmatpush3.bf16.msra.mxu0 %v618_v21 }
  0x79   :  { %575 = vmatprep.subr.bf16.mxu0 %v755_v0 }
  0x7c   :  { %576 = vmatpush3.bf16.msra.mxu0 %v619_v22 }
  0x7d   :  { %577 = vmatprep.subr.bf16.mxu0 %v755_v0 }
  0x80   :  { %578 = vmatpush3.bf16.msra.mxu0 %v620_v23 }
  0x81   :  { %579 = vmatprep.subr.bf16.mxu0 %v755_v0 }
  0x84   :  { %580 = vmatpush3.bf16.msra.mxu0 %v621_v34 }
  0x85   :  { %581 = vmatprep.subr.bf16.mxu0 %v755_v0 }
  0x88   :  { %582 = vmatpush3.bf16.msra.mxu0 %v622_v35 }
 0x13e   :  { %v196_v25 = vpop.f32.mrb[0].mxu0 }
 0x13f   :  { %v197_v26 = vadd.f32 %v472_v24, %v196_v25  ;;  %v545_v27 = vpop.f32.mrb[1].mxu0 }
 0x140   :  { %v199_v28 = vpop.f32.mrb[2].mxu0 }
 0x141   :  { %v200_v29 = vadd.f32 %v472_v24, %v199_v28  ;;  %v546_v30 = vpop.f32.mrb[3].mxu0  ;;  %v203_v31 = vmax.f32 %v197_v26, 0.0 }
 0x143   :  { %v204_v32 = vmax.f32 %v200_v29, 0.0 }
 0x145   :  { %v205_v33 = vpack.c.bf16 %v204_v32, %v203_v31 }
 0x147   :  { %564 = vmatmul.mubr.bf16.vlgmr.msra.gmra.mrb[0].mxu1 %v205_v33 }
 0x21a   :  { %v311_v37 = vpop.f32.mrb[0].mxu1 }
 0x21b   :  { %v312_v38 = vadd.f32 %v482_v36, %v311_v37  ;;  %v565_v39 = vpop.f32.mrb[1].mxu1 }
 0x21c   :  { %v314_v40 = vpop.f32.mrb[2].mxu1 }
 0x21d   :  { %v315_v41 = vadd.f32 %v482_v36, %v314_v40  ;;  %v566_v42 = vpop.f32.mrb[3].mxu1  ;;  %v318_v43 = vmax.f32 %v312_v38, 0.0 }
 0x21f   :  { %v319_v44 = vmax.f32 %v315_v41, 0.0 }
 0x221   :  { %v320_v45 = vpack.c.bf16 %v319_v44, %v318_v43 }
 0x223   :  { %584 = vmatmul.mubr.bf16.vlgmr.msra.gmra.mrb[4].mxu0 %v320_v45 }
 0x2f6   :  { %v426_v47 = vpop.f32.mrb[4].mxu0 }
 0x2f7   :  { %v427_v48 = vadd.f32 %v491_v46, %v426_v47  ;;  %v585_v49 = vpop.f32.mrb[5].mxu0 }
 0x2f8   :  { %v429_v50 = vpop.f32.mrb[6].mxu0 }
 0x2f9   :  { %433 = vmax.xlane.f32.xlu0 %v427_v48  ;;  %v586_v51 = vpop.f32.mrb[7].mxu0  ;;  %v430_v52 = vadd.f32 %v491_v46, %v429_v50 }
 0x2fd   :  { %435 = vmax.xlane.f32.xlu0 %v430_v52 }
 0x386   :  { %v434_v53 = vpop.xlane.xlu0 %433 }
 0x387   :  { %v437_v54 = vsub.f32 %v427_v48, %v434_v53 }
 0x389   :  { %v439_v55 = vmul.f32 1.442695, %v437_v54 }
 0x38a   :  { %v436_v56 = vpop.xlane.xlu0 %435 }
 0x38b   :  { %623 = vpow2.f32 %v439_v55  ;;  %v438_v57 = vsub.f32 %v430_v52, %v436_v56 }
 0x38d   :  { %v441_v58 = vmul.f32 1.442695, %v438_v57 }
 0x38f   :  { %625 = vpow2.f32 %v441_v58 }
 0x395   :  { %v624_v59 = vpop.eup %623 }
 0x396   :  { %443 = vadd.xlane.f32.xlu1 %v624_v59 }
 0x399   :  { %v626_v60 = vpop.eup %625 }
 0x39a   :  { %445 = vadd.xlane.f32.xlu1 %v626_v60 }
 0x423   :  { %v444_v61 = vpop.xlane.xlu1 %443 }
 0x424   :  { %627 = vrcp.f32 %v444_v61 }
 0x427   :  { %v446_v62 = vpop.xlane.xlu1 %445 }
 0x428   :  { %629 = vrcp.f32 %v446_v62 }
 0x42e   :  { %v628_v63 = vpop.eup %627 }
 0x42f   :  { %v449_v0 = vmul.f32 %v628_v63, %v624_v59 }
 0x431   :  { %451 = vst [vmem:[#allocation10] sm:$0xff] %v449_v0 }
 0x432   :  { %v630_v1 = vpop.eup %629 }
 0x433   :  { %v450_v2 = vmul.f32 %v630_v1, %v626_v60 }
 0x435   :  { %452 = vst [vmem:[#allocation10 + $0x8] sm:$0xff] %v450_v2 }
 0x436   :  { %730 = shalt.err (!%p727_p8)
}
 0x437   :  { %s731_s9 = scalar_lea.hbm %s932_s7, 256 }
 0x438   :  { %p732_p9 = scmp.ne.s32.totalorder %s932_s7, %s731_s9  ;;  %p735_p10 = scmp.lt.u32.totalorder %s731_s9, %s932_s7 }
 0x43a   :  { %p737_p11 = pnand %p735_p10, %p732_p9 }
 0x43c   :  { %740 = shalt.err (!%p737_p11)
}
 0x43d   :  { %s758_s16 = smov 128   ;;  %s759_s0 = smov 8  }
 0x43e   :  { %464 = dma.vmem_to_hbm [thread:$0]  %s459_s6, 256, %s932_s7, [#allocation4], %s758_s16, %s758_s16, %s759_s0  }
 0x43f   :  { %747 = dma.done.wait [#allocation4], 256  }
 0x440   :  { %748 = vsyncadd [#allocation4], 4294967040 }
 0x441   :  { %468 = vsyncpa [#allocation3], 1 }
 0x442   :  { %469 = vsyncpa [#allocation6], 1 }
 0x443   :  { %470 = vsyncpa [#allocation9], 1 }
 0x444   :  { %471 = vsyncpa [#allocation4], 1 }

</bundles_post_ra>
